<compile_context>
chip_gen: v7x
topology: tpu7x:2x2x1
jax: 0.10.0
libtpu: 0.0.40
codegen_flags: <defaults>
</compile_context>

<pallas_src>
import jax
import jax.numpy as jnp
from jax.experimental import pallas as pl
from jax.experimental.pallas import tpu as pltpu


def _gru_cell_kernel(a_ref, p1_ref, uh_ref, h_out_ref, h_tilde_ref):
    # a_ref:  (TB, Kp)    augmented LHS  [h_flat | x | 1 | 0-pad]
    # p1_ref: (Kp, 3*IN)  packed weights [P_r | P_z | P_xb_h] (+ zero pad rows)
    # uh_ref: (IN, IN)    block_diag(U_h)
    IN = h_out_ref.shape[1]

    a = a_ref[...]                                  # (TB, Kp)
    h_flat = a[:, :IN]                              # (TB, IN) tile-aligned slice

    # One fused, lane-dense MXU matmul: r_pre | z_pre | (x@W_h + b_h)
    pre = jnp.dot(a, p1_ref[...], preferred_element_type=jnp.float32)  # (TB, 3*IN)
    r = jax.nn.sigmoid(pre[:, :IN])
    z = jax.nn.sigmoid(pre[:, IN:2 * IN])
    xb_h = pre[:, 2 * IN:]

    # Second matmul: (r*h) @ block_diag(U_h); finish h_tilde on VPU/EUP.
    pre_h = jnp.dot(r * h_flat, uh_ref[...],
                    preferred_element_type=jnp.float32) + xb_h
    h_tilde = jnp.tanh(pre_h)

    h_out_ref[...] = z * h_flat + (1.0 - z) * h_tilde     # (TB, IN) lane-dense
    h_tilde_ref[...] = h_tilde


def _round_up(x, m):
    return (x + m - 1) // m * m


def pack_gru_params(params):
    """Pack PyTorch-shaped GRUCell params into the fused/block-diagonal layout.

    Done once (outside the kernel); pure layout plumbing, no math change.
    """
    W_r, W_z, W_h = params["W_r_d"], params["W_z_d"], params["W_h_d"]
    U_r, U_z, U_h = params["U_r_d"], params["U_z_d"], params["U_h_d"]
    b_r, b_z, b_h = params["b_r_d"], params["b_z_d"], params["b_h_d"]
    I, _, N = W_r.shape
    IN = I * N
    K = IN + I + 1                 # [h | x | 1]
    Kp = _round_up(K, 8)           # sublane-align the weight (RHS) contraction dim
    eye = jnp.eye(I, dtype=jnp.float32)

    def block_diag(u):                      # (I,N,N) -> (IN, IN)
        return jnp.einsum("ij,ink->injk", eye, u).reshape(IN, IN)

    def scatter_w(w):                       # (I,1,N) -> (I, IN)
        return (eye[:, :, None] * w[:, 0, :][:, None, :]).reshape(I, IN)

    def pack_gate(u, w, b):                 # -> (K, IN)
        return jnp.concatenate(
            [block_diag(u), scatter_w(w), b.reshape(1, IN)], axis=0)

    p_r = pack_gate(U_r, W_r, b_r)
    p_z = pack_gate(U_z, W_z, b_z)
    # h_tilde's x/bias contribution only (U_h handled in the second matmul).
    p_xbh = jnp.concatenate(
        [jnp.zeros((IN, IN), jnp.float32), scatter_w(W_h), b_h.reshape(1, IN)],
        axis=0)

    p1 = jnp.concatenate([p_r, p_z, p_xbh], axis=1)        # (K, 3*IN)
    p1 = jnp.pad(p1, ((0, Kp - K), (0, 0)))                # zero pad rows

    return {
        "P1": p1,                                           # (Kp, 3*IN)
        "U_h_bd": block_diag(U_h),                          # (IN, IN)
        "input_size": I,
        "n_dim": N,
        "K": K,
        "Kp": Kp,
    }


def _pick_batch_tile(B):
    for tb in (512, 256, 128):
        if B % tb == 0:
            return tb
    return B


def gru_cell_forward(X, h, packed):
    """Pallas GRUCell forward.  Returns (h_new, h_tilde), both (B, I*N)."""
    I, N = packed["input_size"], packed["n_dim"]
    IN = I * N
    Kp = packed["Kp"]
    B = X.shape[0]

    # Augmented LHS [h | x | 1 | 0...]: x-projection and bias ride the MXU
    # contraction for free; trailing zeros only sublane-align the weights.
    tail = jnp.zeros((B, Kp - IN - I), jnp.float32).at[:, 0].set(1.0)
    a1 = jnp.concatenate(
        [h.reshape(B, IN).astype(jnp.float32),
         X.astype(jnp.float32),
         tail], axis=1)                                     # (B, Kp)

    # Grid over batch (parallel -> both TensorCores on v7x for large B).
    tb = _pick_batch_tile(B)
    grid = (B // tb,)

    h_new, h_tilde = pl.pallas_call(
        _gru_cell_kernel,
        out_shape=(jax.ShapeDtypeStruct((B, IN), jnp.float32),
                   jax.ShapeDtypeStruct((B, IN), jnp.float32)),
        grid=grid,
        in_specs=[
            pl.BlockSpec((tb, Kp), lambda b: (b, 0)),        # augmented activations
            pl.BlockSpec((Kp, 3 * IN), lambda b: (0, 0)),    # fused gate weights
            pl.BlockSpec((IN, IN), lambda b: (0, 0)),        # block_diag(U_h)
        ],
        out_specs=(
            pl.BlockSpec((tb, IN), lambda b: (b, 0)),
            pl.BlockSpec((tb, IN), lambda b: (b, 0)),
        ),
        compiler_params=pltpu.CompilerParams(
            dimension_semantics=("parallel",)),
    )(a1, packed["P1"], packed["U_h_bd"])

    return h_new, h_tilde


def init_params(key, input_size, n_dim):
    """Deterministic parameter init mirroring the PyTorch module:
       W_* ~ randn, U_* orthogonal (per-slice QR), b_* = 0."""
    keys = jax.random.split(key, 6)

    def ortho(k):
        a = jax.random.normal(k, (input_size, n_dim, n_dim), dtype=jnp.float32)
        q, _ = jnp.linalg.qr(a)
        return q

    return {
        "W_r_d": jax.random.normal(keys[0], (input_size, 1, n_dim), jnp.float32),
        "W_z_d": jax.random.normal(keys[1], (input_size, 1, n_dim), jnp.float32),
        "W_h_d": jax.random.normal(keys[2], (input_size, 1, n_dim), jnp.float32),
        "U_r_d": ortho(keys[3]),
        "U_z_d": ortho(keys[4]),
        "U_h_d": ortho(keys[5]),
        "b_r_d": jnp.zeros((input_size, n_dim), jnp.float32),
        "b_z_d": jnp.zeros((input_size, n_dim), jnp.float32),
        "b_h_d": jnp.zeros((input_size, n_dim), jnp.float32),
    }


def ref_forward(X, h, p):
    """Pure-JAX reference mirroring the PyTorch einsum semantics."""
    B = X.shape[0]
    I, _, N = p["W_r_d"].shape
    h3 = h.reshape(B, I, N)
    xp = X[:, :, None]  # (B, I, 1)  == X.unsqueeze(1).permute(0,2,1)
    ein = lambda a, w: jnp.einsum("bij,ijk->bik", a, w)
    r = jax.nn.sigmoid(ein(xp, p["W_r_d"]) + ein(h3, p["U_r_d"]) + p["b_r_d"])
    z = jax.nn.sigmoid(ein(xp, p["W_z_d"]) + ein(h3, p["U_z_d"]) + p["b_z_d"])
    h_tilde = jnp.tanh(ein(xp, p["W_h_d"]) + ein(r * h3, p["U_h_d"]) + p["b_h_d"])
    h_new = z * h3 + (1.0 - z) * h_tilde
    return h_new.reshape(B, I * N), h_tilde.reshape(B, I * N)


if __name__ == "__main__":
    B, INPUT_SIZE, N_DIM = 2, 4, 32   # I*N = 128 -> lane-dense outputs

    key = jax.random.PRNGKey(0)
    k_p, k_x, k_h = jax.random.split(key, 3)
    params = init_params(k_p, INPUT_SIZE, N_DIM)
    X = jax.random.normal(k_x, (B, INPUT_SIZE), dtype=jnp.float32)
    h0 = jax.random.normal(k_h, (B, INPUT_SIZE * N_DIM), dtype=jnp.float32)

    packed = pack_gru_params(params)
    h_new, h_tilde = gru_cell_forward(X, h0, packed)
    jax.block_until_ready((h_new, h_tilde))

    h_ref, ht_ref = ref_forward(X, h0, params)
    assert h_new.shape == (B, INPUT_SIZE * N_DIM)
    assert h_tilde.shape == (B, INPUT_SIZE * N_DIM)
    assert jnp.allclose(h_new, h_ref, rtol=1e-3, atol=1e-3)
    assert jnp.allclose(h_tilde, ht_ref, rtol=1e-3, atol=1e-3)

    print("KERNEL_OK")
</pallas_src>

<mosaic_0001>
module attributes {stable_mosaic.version = 11 : i64} {
  func.func @_gru_cell_kernel(%arg0: i32, %arg1: memref<2x136xf32, #tpu.memory_space<vmem>>, %arg2: memref<136x384xf32, #tpu.memory_space<vmem>>, %arg3: memref<128x128xf32, #tpu.memory_space<vmem>>, %arg4: memref<2x128xf32, #tpu.memory_space<vmem>>, %arg5: memref<2x128xf32, #tpu.memory_space<vmem>>) attributes {dimension_semantics = [#tpu.dimension_semantics<parallel>], iteration_bounds = array<i64: 1>, scalar_prefetch = 0 : i64, scratch_operands = 0 : i64, tpu.core_type = #tpu.core_type<tc>, window_params = [{transform_indices = @transform_0, window_bounds = array<i64: 2, 136>}, {pipeline_mode = #tpu.pipeline_mode<synchronous>, transform_indices = @transform_1, window_bounds = array<i64: 136, 384>}, {pipeline_mode = #tpu.pipeline_mode<synchronous>, transform_indices = @transform_2, window_bounds = array<i64: 128, 128>}, {transform_indices = @transform_3, window_bounds = array<i64: 2, 128>}, {transform_indices = @transform_4, window_bounds = array<i64: 2, 128>}]} {
    %c0 = arith.constant 0 : index
    %c0_0 = arith.constant 0 : index
    %0 = vector.load %arg1[%c0, %c0_0] : memref<2x136xf32, #tpu.memory_space<vmem>>, vector<2x136xf32>
    %1 = vector.extract_strided_slice %0 {offsets = [0, 0], sizes = [2, 128], strides = [1, 1]} : vector<2x136xf32> to vector<2x128xf32>
    %c0_1 = arith.constant 0 : index
    %c0_2 = arith.constant 0 : index
    %2 = vector.load %arg2[%c0_1, %c0_2] : memref<136x384xf32, #tpu.memory_space<vmem>>, vector<136x384xf32>
    %cst = arith.constant dense<0.000000e+00> : vector<2x384xf32>
    %3 = tpu.matmul %0, %2, %cst {dimension_numbers = #tpu.dot_dimension_numbers<[1], [0], [0], [1], [0, 0, 1, 1], [], []>} : vector<2x136xf32>, vector<136x384xf32>, vector<2x384xf32> -> vector<2x384xf32>
    %4 = vector.extract_strided_slice %3 {offsets = [0, 0], sizes = [2, 128], strides = [1, 1]} : vector<2x384xf32> to vector<2x128xf32>
    %5 = arith.negf %4 : vector<2x128xf32>
    %6 = math.exp %5 : vector<2x128xf32>
    %cst_3 = arith.constant 1.000000e+00 : f32
    %7 = vector.broadcast %cst_3 : f32 to vector<2x128xf32>
    %8 = arith.addf %7, %6 : vector<2x128xf32>
    %9 = arith.divf %7, %8 : vector<2x128xf32>
    %10 = vector.extract_strided_slice %3 {offsets = [0, 128], sizes = [2, 128], strides = [1, 1]} : vector<2x384xf32> to vector<2x128xf32>
    %11 = arith.negf %10 : vector<2x128xf32>
    %12 = math.exp %11 : vector<2x128xf32>
    %cst_4 = arith.constant 1.000000e+00 : f32
    %13 = vector.broadcast %cst_4 : f32 to vector<2x128xf32>
    %14 = arith.addf %13, %12 : vector<2x128xf32>
    %15 = arith.divf %13, %14 : vector<2x128xf32>
    %16 = vector.extract_strided_slice %3 {offsets = [0, 256], sizes = [2, 128], strides = [1, 1]} : vector<2x384xf32> to vector<2x128xf32>
    %17 = arith.mulf %9, %1 : vector<2x128xf32>
    %c0_5 = arith.constant 0 : index
    %c0_6 = arith.constant 0 : index
    %18 = vector.load %arg3[%c0_5, %c0_6] : memref<128x128xf32, #tpu.memory_space<vmem>>, vector<128x128xf32>
    %cst_7 = arith.constant dense<0.000000e+00> : vector<2x128xf32>
    %19 = tpu.matmul %17, %18, %cst_7 {dimension_numbers = #tpu.dot_dimension_numbers<[1], [0], [0], [1], [0, 0, 1, 1], [], []>} : vector<2x128xf32>, vector<128x128xf32>, vector<2x128xf32> -> vector<2x128xf32>
    %20 = arith.addf %19, %16 : vector<2x128xf32>
    %21 = math.tanh %20 : vector<2x128xf32>
    %22 = arith.mulf %15, %1 : vector<2x128xf32>
    %cst_8 = arith.constant 1.000000e+00 : f32
    %23 = vector.broadcast %cst_8 : f32 to vector<2x128xf32>
    %24 = arith.subf %23, %15 : vector<2x128xf32>
    %25 = arith.mulf %24, %21 : vector<2x128xf32>
    %26 = arith.addf %22, %25 : vector<2x128xf32>
    %c0_9 = arith.constant 0 : index
    %c0_10 = arith.constant 0 : index
    %27 = vector.load %arg4[%c0_9, %c0_10] : memref<2x128xf32, #tpu.memory_space<vmem>>, vector<2x128xf32>
    tpu.vector_store %arg4[%c0_9, %c0_10], %26 {strides = array<i32>} : memref<2x128xf32, #tpu.memory_space<vmem>>, vector<2x128xf32>,
    %c0_11 = arith.constant 0 : index
    %c0_12 = arith.constant 0 : index
    %28 = vector.load %arg5[%c0_11, %c0_12] : memref<2x128xf32, #tpu.memory_space<vmem>>, vector<2x128xf32>
    tpu.vector_store %arg5[%c0_11, %c0_12], %21 {strides = array<i32>} : memref<2x128xf32, #tpu.memory_space<vmem>>, vector<2x128xf32>,
    return
  }
  func.func @transform_0(%arg0: i32) -> (i32, i32) {
    %c0_i32 = arith.constant 0 : i32
    %c0_i32_0 = arith.constant 0 : i32
    return %arg0, %c0_i32 : i32, i32
  }
  func.func @transform_1(%arg0: i32) -> (i32, i32) {
    %c0_i32 = arith.constant 0 : i32
    %c0_i32_0 = arith.constant 0 : i32
    %c0_i32_1 = arith.constant 0 : i32
    return %c0_i32, %c0_i32_0 : i32, i32
  }
  func.func @transform_2(%arg0: i32) -> (i32, i32) {
    %c0_i32 = arith.constant 0 : i32
    %c0_i32_0 = arith.constant 0 : i32
    %c0_i32_1 = arith.constant 0 : i32
    return %c0_i32, %c0_i32_0 : i32, i32
  }
  func.func @transform_3(%arg0: i32) -> (i32, i32) {
    %c0_i32 = arith.constant 0 : i32
    %c0_i32_0 = arith.constant 0 : i32
    return %arg0, %c0_i32 : i32, i32
  }
  func.func @transform_4(%arg0: i32) -> (i32, i32) {
    %c0_i32 = arith.constant 0 : i32
    %c0_i32_0 = arith.constant 0 : i32
    return %arg0, %c0_i32 : i32, i32
  }
}

</mosaic_0001>

<bundles_post_ra>
// kernel: tpu_custom_call.1
= control target key start
LH: loop header
LB: loop body
LE: loop exit
PB: predicated region body
PF: predicated region fallthrough
CT: control target
= control target key end

     0   :  { %10 = vsyncpa [#allocation3], 0  ;;  %s805_s0 = inlined_call_operand.hbm [shape: f32[2,136], index: 0, kind: input, shape index: {}]   ;;  %s806_s1 = inlined_call_operand.hbm [shape: f32[136,384], index: 1, kind: input, shape index: {}]   ;;  %s807_s2 = inlined_call_operand.hbm [shape: f32[128,128], index: 2, kind: input, shape index: {}]   ;;  %s808_s3 = inlined_call_operand.hbm [shape: f32[2,128], index: 3, kind: output, shape index: {0}]   ;;  %s809_s4 = inlined_call_operand.hbm [shape: f32[2,128], index: 4, kind: output, shape index: {1}]  }
   0x1   :  { %11 = vsyncpa [#allocation6], 0 }
   0x2   :  { %12 = vsyncpa [#allocation4], 0 }
   0x3   :  { %13 = vsyncpa [#allocation10], 0  ;;  %s678_s15 = smov [#allocation5]   ;;  %s560_s19 = scalar_lea.hbm %s806_s1, 6528 }
   0x4   :  { %s29_s16 = sshll.u32 %s678_s15, 4  ;;  %p561_p0 = scmp.ne.s32.totalorder %s806_s1, %s560_s19  ;;  %s30_s16 = int_to_ptr.vmem [resolvable:$true] %s29_s16 }
   0x5   :  { %p564_p1 = scmp.lt.u32.totalorder %s560_s19, %s806_s1 }
   0x7   :  { %p566_p2 = pnand %p564_p1, %p561_p0 }
   0x9   :  { %569 = shalt.err (!%p566_p2)
}
   0xa   :  { %s570_s24 = scalar_lea.vmem %s30_s16, 6528  ;;  %p575_p4 = scmp.lt.s32.totalorder %s30_s16, %s30_s16 }
   0xb   :  { %p571_p3 = scmp.ne.s32.totalorder %s30_s16, %s570_s24  ;;  %p576_p5 = scmp.lt.s32.totalorder %s570_s24, %s570_s24 }
   0xd   :  { %p577_p6 = por %p576_p5, %p575_p4 }
   0xf   :  { %p578_p7 = pnand %p577_p6, %p571_p3 }
  0x11   :  { %581 = shalt.err (!%p578_p7)
}
  0x12   :  { %s679_s25 = smov 384   ;;  %s680_s26 = smov 24  }
  0x13   :  { %35 = dma.hbm_to_vmem [thread:$0]  %s806_s1, 6528, %s30_s16, [#allocation6], %s679_s25, %s679_s25, %s680_s26  }
  0x14   :  { %s681_s29 = smov [#allocation2]   ;;  %s682_s5 = smov [#allocation7]  }
  0x15   :  { %s20_s30 = sshll.u32 %s681_s29, 4  ;;  %s41_s6 = sshll.u32 %s682_s5, 4  ;;  %s21_s30 = int_to_ptr.vmem [resolvable:$true] %s20_s30  ;;  %s42_s6 = int_to_ptr.vmem [resolvable:$true] %s41_s6 }
  0x16   :  { %s582_s9 = scalar_lea.hbm %s805_s0, 64 }
  0x17   :  { %p583_p8 = scmp.ne.s32.totalorder %s805_s0, %s582_s9  ;;  %p586_p9 = scmp.lt.u32.totalorder %s582_s9, %s805_s0 }
  0x19   :  { %p588_p10 = pnand %p586_p9, %p583_p8 }
  0x1b   :  { %591 = shalt.err (!%p588_p10)
}
  0x1c   :  { %s592_s1 = scalar_lea.vmem %s21_s30, 64  ;;  %p597_p12 = scmp.lt.s32.totalorder %s21_s30, %s21_s30 }
  0x1d   :  { %p593_p11 = scmp.ne.s32.totalorder %s21_s30, %s592_s1  ;;  %p598_p13 = scmp.lt.s32.totalorder %s592_s1, %s592_s1 }
  0x1f   :  { %p599_p0 = por %p598_p13, %p597_p12 }
  0x21   :  { %p600_p1 = pnand %p599_p0, %p593_p11 }
  0x23   :  { %603 = shalt.err (!%p600_p1)
}
  0x24   :  { %23 = dma.hbm_to_vmem [thread:$0]  %s805_s0, 64, %s21_s30, [#allocation3]  }
  0x25   :  { %s604_s18 = scalar_lea.hbm %s807_s2, 2048 }
  0x26   :  { %p605_p2 = scmp.ne.s32.totalorder %s807_s2, %s604_s18  ;;  %p608_p3 = scmp.lt.u32.totalorder %s604_s18, %s807_s2 }
  0x28   :  { %p610_p4 = pnand %p608_p3, %p605_p2 }
  0x2a   :  { %613 = shalt.err (!%p610_p4)
}
  0x2b   :  { %s614_s23 = scalar_lea.vmem %s42_s6, 2048  ;;  %p619_p6 = scmp.lt.s32.totalorder %s42_s6, %s42_s6 }
  0x2c   :  { %p615_p5 = scmp.ne.s32.totalorder %s42_s6, %s614_s23  ;;  %p620_p7 = scmp.lt.s32.totalorder %s614_s23, %s614_s23 }
  0x2e   :  { %p621_p8 = por %p620_p7, %p619_p6 }
  0x30   :  { %p622_p9 = pnand %p621_p8, %p615_p5 }
  0x32   :  { %625 = shalt.err (!%p622_p9)
}
  0x33   :  { %s683_s0 = smov 128   ;;  %s684_s24 = smov 8  }
  0x34   :  { %47 = dma.hbm_to_vmem [thread:$0]  %s807_s2, 2048, %s42_s6, [#allocation6], %s683_s0, %s683_s0, %s684_s24  }
  0x35   :  { %670 = dma.done.wait [#allocation3], 64  }
  0x36   :  { %671 = vsyncadd [#allocation3], 4294967232 }
  0x37   :  { %672 = dma.done.wait [#allocation6], 8576  }
  0x38   :  { %673 = vsyncadd [#allocation6], 4294958720  ;;  %v685_v0 = vmov 0.0|0.0   ;;  %v59_v1 = vld [vmem:[#allocation5 + $0x8] sm:$0xff]  ;;  %v62_v2 = vld [vmem:[#allocation5 + $0x20] sm:$0xff]  ;;  %v113_v6 = vlaneseq  ;;  %vm119_vm0 = vcmask 64512  }
  0x39   :  { %487 = vmatprep.subr.bf16.mxu1 %v685_v0  ;;  %v58_v3 = vld [vmem:[#allocation5] sm:$0xff]  ;;  %v686_v4 = vmov 1983009808   ;;  %v455_v7 = vpack.c.bf16 %v62_v2, %v59_v1  ;;  %v61_v8 = vld [vmem:[#allocation5 + $0x18] sm:$0xff]  ;;  %v68_v10 = vld [vmem:[#allocation5 + $0x50] sm:$0xff]  ;;  %vm688_vm1 = vmmov 0  }
  0x3a   :  { %v111_v5 = vunpack.c.l.s4 %v686_v4  ;;  %v65_v9 = vld [vmem:[#allocation5 + $0x38] sm:$0xff]  ;;  %v457_v11 = vpack.c.bf16 %v61_v8, %v58_v3  ;;  %v64_v13 = vld [vmem:[#allocation5 + $0x30] sm:$0xff]  ;;  %v67_v14 = vld [vmem:[#allocation5 + $0x48] sm:$0xff]  ;;  %v114_v19 = vshrl.u32 %v113_v6, 7  ;;  %s689_s2 = smov [#allocation9]   ;;  %s690_s28 = smov [#allocation8]  }
  0x3b   :  { %v459_v12 = vpack.c.bf16 %v68_v10, %v65_v9  ;;  %v71_v15 = vld [vmem:[#allocation5 + $0x68] sm:$0xff]  ;;  %456 = vmatprep.subr.bf16.mxu0 %v455_v7  ;;  %v74_v16 = vld [vmem:[#allocation5 + $0x80] sm:$0xff]  ;;  %v461_v17 = vpack.c.bf16 %v67_v14, %v64_v13  ;;  %v73_v22 = vld [vmem:[#allocation5 + $0x78] sm:$0xff]  ;;  %s385_s27 = sshll.u32 %s689_s2, 4  ;;  %s375_s29 = sshll.u32 %s690_s28, 4  ;;  %s386_s27 = int_to_ptr.vmem [resolvable:$true] %s385_s27  ;;  %s376_s29 = int_to_ptr.vmem [resolvable:$true] %s375_s29 }
  0x3c   :  { %458 = vmatpush1.bf16.msra.mxu0 %v457_v11  ;;  %v112_v18 = vunpack.c.0.s8 %v111_v5  ;;  %v463_v20 = vpack.c.bf16 %v74_v16, %v71_v15  ;;  %v70_v21 = vld [vmem:[#allocation5 + $0x60] sm:$0xff]  ;;  %v77_v23 = vld [vmem:[#allocation5 + $0x98] sm:$0xff]  ;;  %v80_v24 = vld [vmem:[#allocation5 + $0xb0] sm:$0xff]  ;;  %s626_s30 = scalar_lea.vmem %s386_s27, 32  ;;  %p631_p11 = scmp.lt.s32.totalorder %s386_s27, %s386_s27 }
  0x3d   :  { %460 = vmatprep.subr.bf16.mxu0 %v459_v12  ;;  %v465_v25 = vpack.c.bf16 %v73_v22, %v70_v21  ;;  %v467_v27 = vpack.c.bf16 %v80_v24, %v77_v23  ;;  %v76_v28 = vld [vmem:[#allocation5 + $0x90] sm:$0xff]  ;;  %v79_v29 = vld [vmem:[#allocation5 + $0xa8] sm:$0xff]  ;;  %v86_v31 = vld [vmem:[#allocation5 + $0xe0] sm:$0xff]  ;;  %v687_v23 = vmov 0.0   ;;  %p627_p10 = scmp.ne.s32.totalorder %s386_s27, %s626_s30  ;;  %p632_p12 = scmp.lt.s32.totalorder %s626_s30, %s626_s30 }
  0x3e   :  { %v115_v26 = vsub.s32 %v112_v18, %v114_v19  ;;  %v83_v30 = vld [vmem:[#allocation5 + $0xc8] sm:$0xff]  ;;  %v753_v32 = vld [vmem:[#allocation2] sm:$0xf]  ;;  %v60_v33 = vld [vmem:[#allocation5 + $0x10] sm:$0xff]  ;;  %v469_v34 = vpack.c.bf16 %v79_v29, %v76_v28 }
  0x3f   :  { %v63_v36 = vld [vmem:[#allocation5 + $0x28] sm:$0xff]  ;;  %v66_v37 = vld [vmem:[#allocation5 + $0x40] sm:$0xff]  ;;  %v69_v38 = vld [vmem:[#allocation5 + $0x58] sm:$0xff]  ;;  %v471_v39 = vpack.c.bf16 %v86_v31, %v83_v30  ;;  %p633_p13 = por %p632_p12, %p631_p11 }
  0x40   :  { %462 = vmatpush1.bf16.msra.mxu0 %v461_v17  ;;  %v756_v35 = vrot.slane %v753_v32, %v115_v26  ;;  %v82_v40 = vld [vmem:[#allocation5 + $0xc0] sm:$0xff]  ;;  %v85_v41 = vld [vmem:[#allocation5 + $0xd8] sm:$0xff]  ;;  %v488_v42 = vpack.c.bf16 %v63_v36, %v60_v33  ;;  %v92_v44 = vld [vmem:[#allocation5 + $0x110] sm:$0xff]  ;;  %v491_v46 = vpack.c.bf16 %v69_v38, %v66_v37 }
  0x41   :  { %464 = vmatprep.subr.bf16.mxu0 %v463_v20  ;;  %v89_v43 = vld [vmem:[#allocation5 + $0xf8] sm:$0xff]  ;;  %v473_v47 = vpack.c.bf16 %v85_v41, %v82_v40  ;;  %v72_v48 = vld [vmem:[#allocation5 + $0x70] sm:$0xff]  ;;  %v75_v49 = vld [vmem:[#allocation5 + $0x88] sm:$0xff]  ;;  %p634_p0 = pnand %p633_p13, %p627_p10 }
  0x42   :  { %v117_v45 = vcombine.high %v756_v35, %v756_v35  ;;  %489 = vmatpush1.bf16.msra.mxu1 %v488_v42  ;;  %v475_v50 = vpack.c.bf16 %v92_v44, %v89_v43  ;;  %v88_v51 = vld [vmem:[#allocation5 + $0xf0] sm:$0xff]  ;;  %v91_v52 = vld [vmem:[#allocation5 + $0x108] sm:$0xff]  ;;  %v98_v54 = vld [vmem:[#allocation5 + $0x140] sm:$0xff]  ;;  %v494_v55 = vpack.c.bf16 %v75_v49, %v72_v48 }
  0x43   :  { %490 = vmatprep.subr.bf16.mxu1 %v685_v0  ;;  %v95_v53 = vld [vmem:[#allocation5 + $0x128] sm:$0xff]  ;;  %v477_v56 = vpack.c.bf16 %v91_v52, %v88_v51  ;;  %v78_v57 = vld [vmem:[#allocation5 + $0xa0] sm:$0xff]  ;;  %v81_v58 = vld [vmem:[#allocation5 + $0xb8] sm:$0xff] }
  0x44   :  { %466 = vmatpush1.bf16.msra.mxu0 %v465_v25  ;;  %399 = vmatprep.mubr.msk.f32.mxu0 %vm119_vm0, %v117_v45  ;;  %v479_v59 = vpack.c.bf16 %v98_v54, %v95_v53  ;;  %v94_v60 = vld [vmem:[#allocation5 + $0x120] sm:$0xff]  ;;  %v97_v61 = vld [vmem:[#allocation5 + $0x138] sm:$0xff]  ;;  %v104_v63 = vld [vmem:[#allocation5 + $0x170] sm:$0xff]  ;;  %v497_v1 = vpack.c.bf16 %v81_v58, %v78_v57 }
  0x45   :  { %468 = vmatprep.subr.bf16.mxu0 %v467_v27  ;;  %400 = vmatprep.mubr.msk.f32.mxu1 %vm119_vm0, %v117_v45  ;;  %v101_v62 = vld [vmem:[#allocation5 + $0x158] sm:$0xff]  ;;  %v481_v2 = vpack.c.bf16 %v97_v61, %v94_v60  ;;  %v84_v3 = vld [vmem:[#allocation5 + $0xd0] sm:$0xff]  ;;  %v87_v4 = vld [vmem:[#allocation5 + $0xe8] sm:$0xff] }
  0x46   :  { %492 = vmatpush1.bf16.msra.mxu1 %v491_v46  ;;  %v483_v5 = vpack.c.bf16 %v104_v63, %v101_v62  ;;  %v100_v6 = vld [vmem:[#allocation5 + $0x150] sm:$0xff]  ;;  %v103_v7 = vld [vmem:[#allocation5 + $0x168] sm:$0xff]  ;;  %v500_v8 = vpack.c.bf16 %v87_v4, %v84_v3  ;;  %v90_v10 = vld [vmem:[#allocation5 + $0x100] sm:$0xff] }
  0x47   :  { %493 = vmatprep.subr.bf16.mxu1 %v685_v0  ;;  %v485_v9 = vpack.c.bf16 %v103_v7, %v100_v6  ;;  %v93_v11 = vld [vmem:[#allocation5 + $0x118] sm:$0xff]  ;;  %v107_v12 = vld [vmem:[#allocation5 + $0x188] sm:$0xff]  ;;  %v96_v14 = vld [vmem:[#allocation5 + $0x130] sm:$0xff] }
  0x48   :  { %470 = vmatpush1.bf16.msra.mxu0 %v469_v34  ;;  %v503_v13 = vpack.c.bf16 %v93_v11, %v90_v10  ;;  %v99_v15 = vld [vmem:[#allocation5 + $0x148] sm:$0xff]  ;;  %v106_v16 = vld [vmem:[#allocation5 + $0x180] sm:$0xff]  ;;  %v105_v19 = vld [vmem:[#allocation5 + $0x178] sm:$0xff] }
  0x49   :  { %472 = vmatprep.subr.bf16.mxu0 %v471_v39  ;;  %v506_v17 = vpack.c.bf16 %v99_v15, %v96_v14  ;;  %v102_v18 = vld [vmem:[#allocation5 + $0x160] sm:$0xff]  ;;  %v276_v21 = vld [vmem:[#allocation7] sm:$0xff]  ;;  %v108_v24 = vld [vmem:[#allocation5 + $0x190] sm:$0xff] }
  0x4a   :  { %495 = vmatpush1.bf16.msra.mxu1 %v494_v55  ;;  %v509_v20 = vpack.c.bf16 %v105_v19, %v102_v18  ;;  %v277_v22 = vld [vmem:[#allocation7 + $0x8] sm:$0xff]  ;;  %v278_v26 = vld [vmem:[#allocation7 + $0x10] sm:$0xff]  ;;  %v279_v27 = vld [vmem:[#allocation7 + $0x18] sm:$0xff] }
  0x4b   :  { %496 = vmatprep.subr.bf16.mxu1 %v685_v0  ;;  %v512_v25 = vpack.c.bf16 %v277_v22, %v276_v21  ;;  %v515_v28 = vpack.c.bf16 %v279_v27, %v278_v26  ;;  %v280_v29 = vld [vmem:[#allocation7 + $0x20] sm:$0xff]  ;;  %v281_v30 = vld [vmem:[#allocation7 + $0x28] sm:$0xff]  ;;  %v282_v33 = vld [vmem:[#allocation7 + $0x30] sm:$0xff] }
  0x4c   :  { %474 = vmatpush1.bf16.msra.mxu0 %v473_v47  ;;  %v518_v31 = vpack.c.bf16 %v281_v30, %v280_v29  ;;  %v283_v34 = vld [vmem:[#allocation7 + $0x38] sm:$0xff]  ;;  %v285_v37 = vld [vmem:[#allocation7 + $0x48] sm:$0xff]  ;;  %v286_v39 = vld [vmem:[#allocation7 + $0x50] sm:$0xff] }
  0x4d   :  { %476 = vmatprep.subr.bf16.mxu0 %v475_v50  ;;  %v521_v36 = vpack.c.bf16 %v283_v34, %v282_v33  ;;  %v287_v40 = vld [vmem:[#allocation7 + $0x58] sm:$0xff]  ;;  %v288_v42 = vld [vmem:[#allocation7 + $0x60] sm:$0xff]  ;;  %v289_v43 = vld [vmem:[#allocation7 + $0x68] sm:$0xff] }
  0x4e   :  { %498 = vmatpush1.bf16.msra.mxu1 %v497_v1  ;;  %v527_v41 = vpack.c.bf16 %v287_v40, %v286_v39  ;;  %v530_v44 = vpack.c.bf16 %v289_v43, %v288_v42  ;;  %v290_v45 = vld [vmem:[#allocation7 + $0x70] sm:$0xff]  ;;  %v291_v46 = vld [vmem:[#allocation7 + $0x78] sm:$0xff] }
  0x4f   :  { %499 = vmatprep.subr.bf16.mxu1 %v685_v0  ;;  %v533_v47 = vpack.c.bf16 %v291_v46, %v290_v45 }
  0x50   :  { %478 = vmatpush1.bf16.msra.mxu0 %v477_v56 }
  0x51   :  { %480 = vmatprep.subr.bf16.mxu0 %v479_v59 }
  0x52   :  { %501 = vmatpush1.bf16.msra.mxu1 %v500_v8 }
  0x53   :  { %502 = vmatprep.subr.bf16.mxu1 %v685_v0 }
  0x54   :  { %482 = vmatpush1.bf16.msra.mxu0 %v481_v2 }
  0x55   :  { %484 = vmatprep.subr.bf16.mxu0 %v483_v5 }
  0x56   :  { %504 = vmatpush1.bf16.msra.mxu1 %v503_v13 }
  0x57   :  { %505 = vmatprep.subr.bf16.mxu1 %v685_v0 }
  0x58   :  { %486 = vmatpush1.bf16.msra.mxu0 %v485_v9 }
  0x59   :  { %154 = vmatprep.subr.mxu0 %v107_v12 }
  0x5a   :  { %507 = vmatpush1.bf16.msra.mxu1 %v506_v17 }
  0x5b   :  { %508 = vmatprep.subr.bf16.mxu1 %v685_v0 }
  0x5c   :  { %155 = vmatpush1.msra.mxu0 %v106_v16 }
  0x5d   :  { %187 = vmatmul.mubr.f32.vlgmr.msra.gmra.mrb[0].mxu0 %v756_v35 }
  0x5e   :  { %510 = vmatpush1.bf16.msra.mxu1 %v509_v20 }
  0x5f   :  { %225 = vmatprep.subr.mxu1 %v687_v23 }
  0x62   :  { %226 = vmatpush1.msra.mxu1 %v108_v24 }
  0x63   :  { %511 = vmatprep.subr.bf16.mxu1 %v685_v0  ;;  %258 = vmatmul.mubr.f32.vlgmr.msra.gmra.mrb[0].mxu1 %v756_v35  ;;  %v284_v35 = vld [vmem:[#allocation7 + $0x40] sm:$0xff] }
  0x64   :  { %513 = vmatpush3.bf16.msra.mxu1 %v512_v25  ;;  %v524_v38 = vpack.c.bf16 %v285_v37, %v284_v35  ;;  %452 = vmatprep.mubr.msk.f32.mxu1 %vm688_vm1, %v687_v23 }
  0x65   :  { %514 = vmatprep.subr.bf16.mxu1 %v685_v0 }
  0x68   :  { %516 = vmatpush3.bf16.msra.mxu1 %v515_v28 }
  0x69   :  { %517 = vmatprep.subr.bf16.mxu1 %v685_v0 }
  0x6c   :  { %519 = vmatpush3.bf16.msra.mxu1 %v518_v31 }
  0x6d   :  { %520 = vmatprep.subr.bf16.mxu1 %v685_v0 }
  0x70   :  { %522 = vmatpush3.bf16.msra.mxu1 %v521_v36 }
  0x71   :  { %523 = vmatprep.subr.bf16.mxu1 %v685_v0 }
  0x74   :  { %525 = vmatpush3.bf16.msra.mxu1 %v524_v38 }
  0x75   :  { %526 = vmatprep.subr.bf16.mxu1 %v685_v0 }
  0x78   :  { %528 = vmatpush3.bf16.msra.mxu1 %v527_v41 }
  0x79   :  { %529 = vmatprep.subr.bf16.mxu1 %v685_v0 }
  0x7c   :  { %531 = vmatpush3.bf16.msra.mxu1 %v530_v44 }
  0x7d   :  { %532 = vmatprep.subr.bf16.mxu1 %v685_v0 }
  0x80   :  { %534 = vmatpush3.bf16.msra.mxu1 %v533_v47 }
 0x130   :  { %v188_v48 = vpop.f32.mrb[0].mxu0 }
 0x131   :  { %v401_v49 = vmul.f32 -1.442695, %v188_v48  ;;  %v190_v50 = vpop.f32.mrb[1].mxu0 }
 0x132   :  { %v402_v55 = vmul.f32 -1.442695, %v190_v50 }
 0x133   :  { %550 = vpow2.f32 %v401_v49 }
 0x13d   :  { %v551_v51 = vpop.eup %550 }
 0x13e   :  { %v266_v52 = vadd.f32 1.0, %v551_v51 }
 0x140   :  { %552 = vrcp.f32 %v266_v52 }
 0x141   :  { %554 = vpow2.f32 %v402_v55 }
 0x14a   :  { %v553_v53 = vpop.eup %552 }
 0x14b   :  { %v275_v54 = vmul.f32 %v553_v53, %v753_v32  ;;  %v555_v56 = vpop.eup %554 }
 0x14c   :  { %v272_v57 = vadd.f32 1.0, %v555_v56 }
 0x14d   :  { %453 = vmatmul.mubr.f32.vlgmr.msra.gmra.mrb[0].mxu1 %v275_v54 }
 0x14e   :  { %556 = vrcp.f32 %v272_v57 }
 0x158   :  { %v557_v59 = vpop.eup %556 }
 0x159   :  { %v364_v60 = vsub.f32 1.0, %v557_v59  ;;  %v363_v62 = vmul.f32 %v557_v59, %v753_v32 }
 0x220   :  { %v358_v58 = vpop.f32.mrb[0].mxu1 }
 0x221   :  { %558 = vtanh.f32 %v358_v58  ;;  %v454_v0 = vpop.f32.mrb[1].mxu1 }
 0x22b   :  { %v559_v61 = vpop.eup %558 }
 0x22c   :  { %368 = vst [vmem:[#allocation9] sm:$0x3] %v559_v61  ;;  %v365_v63 = vmul.f32 %v559_v61, %v364_v60 }
 0x22d   :  { %637 = shalt.err (!%p634_p0)
}
 0x22e   :  { %s638_s7 = scalar_lea.hbm %s809_s4, 32 }
 0x22f   :  { %p639_p1 = scmp.ne.s32.totalorder %s809_s4, %s638_s7  ;;  %p642_p2 = scmp.lt.u32.totalorder %s638_s7, %s809_s4 }
 0x231   :  { %p644_p3 = pnand %p642_p2, %p639_p1 }
 0x233   :  { %647 = shalt.err (!%p644_p3)
}
 0x234   :  { %388 = dma.vmem_to_hbm [thread:$0]  %s386_s27, 32, %s809_s4, [#allocation10]   ;;  %v366_v32 = vadd.f32 %v365_v63, %v363_v62 }
 0x235   :  { %s648_s1 = scalar_lea.vmem %s376_s29, 32  ;;  %p653_p5 = scmp.lt.s32.totalorder %s376_s29, %s376_s29 }
 0x236   :  { %367 = vst [vmem:[#allocation8] sm:$0x3] %v366_v32  ;;  %p649_p4 = scmp.ne.s32.totalorder %s376_s29, %s648_s1  ;;  %p654_p6 = scmp.lt.s32.totalorder %s648_s1, %s648_s1 }
 0x238   :  { %p655_p7 = por %p654_p6, %p653_p5 }
 0x23a   :  { %p656_p8 = pnand %p655_p7, %p649_p4 }
 0x23c   :  { %659 = shalt.err (!%p656_p8)
}
 0x23d   :  { %s660_s16 = scalar_lea.hbm %s808_s3, 32 }
 0x23e   :  { %p661_p9 = scmp.ne.s32.totalorder %s808_s3, %s660_s16  ;;  %p664_p10 = scmp.lt.u32.totalorder %s660_s16, %s808_s3 }
 0x240   :  { %p666_p11 = pnand %p664_p10, %p661_p9 }
 0x242   :  { %669 = shalt.err (!%p666_p11)
}
 0x243   :  { %378 = dma.vmem_to_hbm [thread:$0]  %s376_s29, 32, %s808_s3, [#allocation4]  }
 0x244   :  { %674 = dma.done.wait [#allocation4], 32  }
 0x245   :  { %675 = vsyncadd [#allocation4], 4294967264 }
 0x246   :  { %676 = dma.done.wait [#allocation10], 32  }
 0x247   :  { %677 = vsyncadd [#allocation10], 4294967264 }
 0x248   :  { %395 = vsyncpa [#allocation3], 1 }
 0x249   :  { %396 = vsyncpa [#allocation6], 1 }
 0x24a   :  { %397 = vsyncpa [#allocation4], 1 }
 0x24b   :  { %398 = vsyncpa [#allocation10], 1 }

</bundles_post_ra>
